<compile_context>
chip_gen: v7x
topology: tpu7x:2x2x1
jax: 0.10.0
libtpu: 0.0.40
codegen_flags: <defaults>
</compile_context>

<pallas_src>
import jax
import jax.numpy as jnp
from jax.experimental import pallas as pl
from jax.experimental.pallas import tpu as pltpu

_SUBLANE = 8
_MIN_LANE = 128      # minimum unmasked-store width
_WIDE_LANE = 512     # wide lane-dense slab for large N


def _scalar_linear_kernel(x_ref, w_ref, b_ref, o_ref):
    # x_ref: (tile_rows, lane) VMEM tile of the lane-packed input.
    # w_ref, b_ref: (1,) f32 scalars in SMEM.
    w = w_ref[0]
    b = b_ref[0]
    # Pure VPU: one vmul + one vadd per vreg; no MXU, no transpose, no XLU.
    o_ref[...] = (x_ref[...] * w + b).astype(o_ref.dtype)


def linear_forward(x, weight, bias, *, tile_rows=1024):
    """Pallas equivalent of torch.nn.Linear for the scalar-regression case.

    x:      (N, 1) float
    weight: (1, 1) float   (PyTorch (out_features, in_features) layout)
    bias:   (1,)   float
    returns (N, 1) same dtype as x
    """
    n, d_in = x.shape
    d_out, d_in_w = weight.shape
    # This kernel specializes D_in == D_out == 1 (the module's fixed config).
    # TODO(synk): a general D_in/D_out path would pre-transpose W and run a
    # lane-dense (M, K) @ (K, N) MXU tiling instead.
    assert d_in == 1 and d_out == 1 and d_in_w == 1, \
        "kernel specialized for nn.Linear(1, 1)"

    # ---- lane-dense packing: (N, 1) -> (rows, lane) -------------------------
    # Wide slabs for large N (bigger, more contiguous DMAs); minimal lane
    # width for small N to keep padding tiny.
    lane = _WIDE_LANE if n >= _WIDE_LANE * _SUBLANE else _MIN_LANE

    # Pad rows only to the sublane multiple (8). Pallas masks the ragged last
    # grid block along the row axis, so no padding to a tile_rows multiple.
    rows = max(_SUBLANE, pl.cdiv(pl.cdiv(n, lane), _SUBLANE) * _SUBLANE)
    total = rows * lane

    if total == n:
        x_packed = x.reshape(rows, lane)          # contiguous reshape: free
    else:
        x_packed = jnp.pad(x.reshape(-1), (0, total - n)).reshape(rows, lane)

    # ---- tile / grid sizing -------------------------------------------------
    tile_rows = min(tile_rows, rows)
    if rows >= 2 * _SUBLANE:
        # Guarantee >= 2 grid steps so v7x's two TensorCores both get work.
        half = max(_SUBLANE, (rows // 2 // _SUBLANE) * _SUBLANE)
        tile_rows = min(tile_rows, half)
    grid = (pl.cdiv(rows, tile_rows),)

    w_s = weight.reshape(1).astype(jnp.float32)   # SMEM scalar
    b_s = bias.reshape(1).astype(jnp.float32)     # SMEM scalar

    y_packed = pl.pallas_call(
        _scalar_linear_kernel,
        out_shape=jax.ShapeDtypeStruct((rows, lane), x.dtype),
        grid=grid,
        in_specs=[
            pl.BlockSpec((tile_rows, lane), lambda i: (i, 0)),
            pl.BlockSpec(memory_space=pltpu.MemorySpace.SMEM),
            pl.BlockSpec(memory_space=pltpu.MemorySpace.SMEM),
        ],
        out_specs=pl.BlockSpec((tile_rows, lane), lambda i: (i, 0)),
        compiler_params=pltpu.CompilerParams(
            dimension_semantics=("parallel",),
            # Let XLA fuse the pad/reshape producer into the input DMA
            # instead of materializing an extra HBM pass.
            allow_input_fusion=[True, False, False],
        ),
        cost_estimate=pl.CostEstimate(
            flops=2 * total, bytes_accessed=8 * total, transcendentals=0),
    )(x_packed, w_s, b_s)

    # Padded tail positions hold `b` (0*w + b); they are sliced away here.
    return y_packed.reshape(-1)[:n].reshape(n, d_out)


class LinearRegressionModel:
    """JAX/Pallas mirror of the PyTorch LinearRegressionModel."""

    def __init__(self, input_dim, output_dim, key):
        # Deterministic init matching nn.Linear's default:
        # U(-1/sqrt(in_features), 1/sqrt(in_features)) for weight and bias.
        kw, kb = jax.random.split(key)
        bound = 1.0 / jnp.sqrt(jnp.float32(input_dim))
        self.weight = jax.random.uniform(
            kw, (output_dim, input_dim), jnp.float32, -bound, bound)
        self.bias = jax.random.uniform(
            kb, (output_dim,), jnp.float32, -bound, bound)

    def __call__(self, x):
        return linear_forward(x, self.weight, self.bias)


if __name__ == "__main__":
    input_dim = 1
    output_dim = 1
    batch = 8

    key = jax.random.PRNGKey(0)
    k_param, k_x = jax.random.split(key)

    model = LinearRegressionModel(input_dim, output_dim, k_param)

    # x: (batch, input_dim), same convention as the PyTorch module.
    x = jax.random.normal(k_x, (batch, input_dim), jnp.float32)

    out = model(x)
    out = jax.block_until_ready(out)

    # Sanity check against plain-JAX reference.
    ref = x @ model.weight.T + model.bias
    assert out.shape == (batch, output_dim)
    assert jnp.allclose(out, ref, atol=1e-5, rtol=1e-5)

    print("KERNEL_OK")
</pallas_src>

<mosaic_0001>
module attributes {stable_mosaic.version = 11 : i64} {
  func.func @_scalar_linear_kernel(%arg0: i32, %arg1: memref<8x128xf32, #tpu.memory_space<vmem>>, %arg2: memref<1xf32, #tpu.memory_space<smem>>, %arg3: memref<1xf32, #tpu.memory_space<smem>>, %arg4: memref<8x128xf32, #tpu.memory_space<vmem>>) attributes {dimension_semantics = [#tpu.dimension_semantics<parallel>], iteration_bounds = array<i64: 1>, scalar_prefetch = 0 : i64, scratch_operands = 0 : i64, tpu.core_type = #tpu.core_type<tc>, window_params = [{transform_indices = @transform_0, window_bounds = array<i64: 8, 128>}, {transform_indices = @transform_1, window_bounds = array<i64: 1>}, {transform_indices = @transform_2, window_bounds = array<i64: 1>}, {transform_indices = @transform_3, window_bounds = array<i64: 8, 128>}]} {
    %c0 = arith.constant 0 : index
    %0 = memref.load %arg2[%c0] : memref<1xf32, #tpu.memory_space<smem>>
    %c0_0 = arith.constant 0 : index
    %1 = memref.load %arg3[%c0_0] : memref<1xf32, #tpu.memory_space<smem>>
    %c0_1 = arith.constant 0 : index
    %c0_2 = arith.constant 0 : index
    %2 = vector.load %arg1[%c0_1, %c0_2] : memref<8x128xf32, #tpu.memory_space<vmem>>, vector<8x128xf32>
    %3 = vector.broadcast %0 : f32 to vector<8x128xf32>
    %4 = arith.mulf %2, %3 : vector<8x128xf32>
    %5 = vector.broadcast %1 : f32 to vector<8x128xf32>
    %6 = arith.addf %4, %5 : vector<8x128xf32>
    %c0_3 = arith.constant 0 : index
    %c0_4 = arith.constant 0 : index
    %7 = vector.load %arg4[%c0_3, %c0_4] : memref<8x128xf32, #tpu.memory_space<vmem>>, vector<8x128xf32>
    tpu.vector_store %arg4[%c0_3, %c0_4], %6 {strides = array<i32>} : memref<8x128xf32, #tpu.memory_space<vmem>>, vector<8x128xf32>,
    return
  }
  func.func @transform_0(%arg0: i32) -> (i32, i32) {
    %c0_i32 = arith.constant 0 : i32
    %c0_i32_0 = arith.constant 0 : i32
    return %arg0, %c0_i32 : i32, i32
  }
  func.func @transform_1(%arg0: i32) -> i32 {
    %c0_i32 = arith.constant 0 : i32
    %c0_i32_0 = arith.constant 0 : i32
    return %c0_i32 : i32
  }
  func.func @transform_2(%arg0: i32) -> i32 {
    %c0_i32 = arith.constant 0 : i32
    %c0_i32_0 = arith.constant 0 : i32
    return %c0_i32 : i32
  }
  func.func @transform_3(%arg0: i32) -> (i32, i32) {
    %c0_i32 = arith.constant 0 : i32
    %c0_i32_0 = arith.constant 0 : i32
    return %arg0, %c0_i32 : i32, i32
  }
}

</mosaic_0001>

<bundles_post_ra>
// kernel: tpu_custom_call.1
= control target key start
LH: loop header
LB: loop body
LE: loop exit
PB: predicated region body
PF: predicated region fallthrough
CT: control target
= control target key end

     0   :  { %10 = vsyncpa [#allocation5], 0  ;;  %s154_s0 = inlined_call_operand.hbm [shape: f32[8,128], index: 0, kind: input, shape index: {}]   ;;  %s155_s1 = inlined_call_operand.<no memory space> [shape: f32[1], index: 1, kind: input, shape index: {}]   ;;  %s156_s2 = inlined_call_operand.<no memory space> [shape: f32[1], index: 2, kind: input, shape index: {}]   ;;  %s157_s3 = inlined_call_operand.hbm [shape: f32[8,128], index: 3, kind: output, shape index: {}]  }
   0x1   :  { %11 = vsyncpa [#allocation6], 0  ;;  %s102_s12 = smov [#allocation4]   ;;  %s54_s16 = scalar_lea.hbm %s154_s0, 128 }
   0x2   :  { %s18_s13 = sshll.u32 %s102_s12, 4  ;;  %p55_p0 = scmp.ne.s32.totalorder %s154_s0, %s54_s16  ;;  %s19_s13 = int_to_ptr.vmem [resolvable:$true] %s18_s13 }
   0x3   :  { %p58_p1 = scmp.lt.u32.totalorder %s54_s16, %s154_s0 }
   0x5   :  { %p60_p2 = pnand %p58_p1, %p55_p0 }
   0x7   :  { %63 = shalt.err (!%p60_p2)
}
   0x8   :  { %s64_s21 = scalar_lea.vmem %s19_s13, 128  ;;  %p69_p4 = scmp.lt.s32.totalorder %s19_s13, %s19_s13 }
   0x9   :  { %p65_p3 = scmp.ne.s32.totalorder %s19_s13, %s64_s21  ;;  %p70_p5 = scmp.lt.s32.totalorder %s64_s21, %s64_s21 }
   0xb   :  { %p71_p6 = por %p70_p5, %p69_p4 }
   0xd   :  { %p72_p7 = pnand %p71_p6, %p65_p3 }
   0xf   :  { %75 = shalt.err (!%p72_p7)
}
  0x10   :  { %21 = dma.hbm_to_vmem [thread:$0]  %s154_s0, 128, %s19_s13, [#allocation5]  }
  0x11   :  { %98 = dma.done.wait [#allocation5], 128  }
  0x12   :  { %99 = vsyncadd [#allocation5], 4294967168  ;;  %v32_v0 = vstv %s155_s1  ;;  %v31_v1 = vld [vmem:[#allocation4] sm:$0xff]  ;;  %v34_v2 = vstv %s156_s2  ;;  %s103_s28 = smov [#allocation7]  }
  0x13   :  { %s43_s29 = sshll.u32 %s103_s28, 4  ;;  %v33_v3 = vmul.f32 %v32_v0, %v31_v1  ;;  %s44_s29 = int_to_ptr.vmem [resolvable:$true] %s43_s29 }
  0x14   :  { %s76_s30 = scalar_lea.vmem %s44_s29, 128  ;;  %p81_p9 = scmp.lt.s32.totalorder %s44_s29, %s44_s29 }
  0x15   :  { %v35_v4 = vadd.f32 %v34_v2, %v33_v3  ;;  %p77_p8 = scmp.ne.s32.totalorder %s44_s29, %s76_s30  ;;  %p82_p10 = scmp.lt.s32.totalorder %s76_s30, %s76_s30 }
  0x17   :  { %36 = vst [vmem:[#allocation7] sm:$0xff] %v35_v4  ;;  %p83_p11 = por %p82_p10, %p81_p9 }
  0x19   :  { %p84_p12 = pnand %p83_p11, %p77_p8 }
  0x1b   :  { %87 = shalt.err (!%p84_p12)
}
  0x1c   :  { %s88_s4 = scalar_lea.hbm %s157_s3, 128 }
  0x1d   :  { %p89_p13 = scmp.ne.s32.totalorder %s157_s3, %s88_s4  ;;  %p92_p0 = scmp.lt.u32.totalorder %s88_s4, %s157_s3 }
  0x1f   :  { %p94_p1 = pnand %p92_p0, %p89_p13 }
  0x21   :  { %97 = shalt.err (!%p94_p1)
}
  0x22   :  { %46 = dma.vmem_to_hbm [thread:$0]  %s44_s29, 128, %s157_s3, [#allocation6]  }
  0x23   :  { %100 = dma.done.wait [#allocation6], 128  }
  0x24   :  { %101 = vsyncadd [#allocation6], 4294967168 }
  0x25   :  { %50 = vsyncpa [#allocation5], 1 }
  0x26   :  { %51 = vsyncpa [#allocation6], 1 }

</bundles_post_ra>
